<compile_context>
chip_gen: v7x
topology: tpu7x:2x2x1
jax: 0.10.0
libtpu: 0.0.40
codegen_flags: <defaults>
</compile_context>

<pallas_src>
import jax
import jax.numpy as jnp
from jax.experimental import pallas as pl
from jax.experimental.pallas import tpu as pltpu


def _round_up(n, m):
    return ((n + m - 1) // m) * m


def _round_down_min(n, m):
    return max((n // m) * m, m)


def _mlp_kernel(xT_ref, w1T_ref, b1_ref, w2T_ref, b2_ref, w3T_ref, b3_ref,
                out_ref):
    """One batch tile. Activations are (features, TB); TB on the lane axis."""
    xT = xT_ref[...]                                     # (D+1, TB) bf16

    # Layer 1: W1^T @ X^T + b1 -> (H, TB), f32 accumulate.
    h1 = jnp.dot(w1T_ref[...], xT, preferred_element_type=jnp.float32)
    h1 = jnp.maximum(h1 + b1_ref[...], 0.0)              # bias + ReLU in f32

    # Layer 2: W2^T @ H1 + b2 -> (H, TB)
    h2 = jnp.dot(w2T_ref[...], h1.astype(w2T_ref.dtype),
                 preferred_element_type=jnp.float32)
    h2 = jnp.maximum(h2 + b2_ref[...], 0.0)

    # Layer 3: W3^T @ H2 + b3 -> (D, TB)
    out = jnp.dot(w3T_ref[...], h2.astype(w3T_ref.dtype),
                  preferred_element_type=jnp.float32) + b3_ref[...]
    out_ref[...] = out.astype(out_ref.dtype)


def prepare_params(params, diffusion_steps, compute_dtype=jnp.bfloat16):
    """One-time prep: transpose weights to (out, in), biases to (out, 1).

    `params` stores weights as (in_features, out_features), i.e. y = x @ W + b
    (equivalent to PyTorch's x @ W.T + b).  1/diffusion_steps is kept so the
    wrapper can build the folded t row from raw integer t.
    """
    return {
        "w1T": jnp.asarray(params["w1"].T, compute_dtype),            # (H, D+1)
        "b1":  params["b1"].reshape(-1, 1).astype(jnp.float32),       # (H, 1)
        "w2T": jnp.asarray(params["w2"].T, compute_dtype),            # (H, H)
        "b2":  params["b2"].reshape(-1, 1).astype(jnp.float32),       # (H, 1)
        "w3T": jnp.asarray(params["w3"].T, compute_dtype),            # (D, H)
        "b3":  params["b3"].reshape(-1, 1).astype(jnp.float32),       # (D, 1)
        "inv_steps": jnp.float32(1.0 / float(diffusion_steps)),
    }


def _jnp_fallback(x_in, kp, out_dtype, out_layout):
    """Fused XLA path for tiny batches (pallas_call launch cost dominates)."""
    h1 = jnp.maximum(x_in @ kp["w1T"].T.astype(jnp.float32) + kp["b1"].T, 0.0)
    h2 = jnp.maximum(h1 @ kp["w2T"].T.astype(jnp.float32) + kp["b2"].T, 0.0)
    out = h2 @ kp["w3T"].T.astype(jnp.float32) + kp["b3"].T
    out = out.astype(out_dtype)
    return out.T if out_layout == "db" else out


def diffusion_mlp_forward(x, t, kparams, *,
                          max_tile=32768,
                          vmem_budget=20 * 1024 * 1024,
                          min_kernel_batch=512,
                          force_kernel=False,
                          x_layout="bd",
                          out_layout="bd",
                          out_dtype=jnp.bfloat16):
    """Pallas implementation of DiffusionMLP.forward.

    x: (B, D) if x_layout=="bd", or (D, B) feature-major if x_layout=="db".
    t: (B,) integer timesteps.
    Returns (B, D) if out_layout=="bd", else (D, B), in out_dtype.
    """
    compute_dtype = kparams["w1T"].dtype
    H, Din = kparams["w1T"].shape
    D = Din - 1

    if x_layout == "bd":
        B = x.shape[0]
        xT_feat = x.T                                    # (D, B)
    else:                                                # "db": already (D, B)
        B = x.shape[1]
        xT_feat = x

    t_norm = t.astype(jnp.float32) * kparams["inv_steps"]   # (B,)

    if (B < min_kernel_batch) and not force_kernel:
        x_in = jnp.concatenate(
            [xT_feat.T.astype(jnp.float32), t_norm[:, None]], axis=1)
        return _jnp_fallback(x_in, kparams, out_dtype, out_layout)

    # Fold t/steps in as the (D+1)-th feature row; single bf16 (D+1, B) slab.
    xT = jnp.concatenate(
        [xT_feat.astype(jnp.float32), t_norm[None, :]], axis=0
    ).astype(compute_dtype)                              # (D+1, B)

    out_bytes = jnp.dtype(out_dtype).itemsize

    # --- Batch tile selection ------------------------------------------------
    if B <= 256:
        TB = B                      # single full-array block (no (8,128) rule)
    else:
        # VMEM bytes held live per batch column:
        per_col = (2 * 2 * Din          # xT bf16, double-buffered
                   + 2 * out_bytes * D  # output tile, double-buffered
                   + 2 * 4 * H          # h1, h2 intermediates in f32
                   + 2 * 2 * H)         # bf16 casts of h1/h2 feeding the MXU
        tb_vmem = _round_down_min(vmem_budget // per_col, 128)
        tb_half = _round_up(pl.cdiv(B, 2), 128)   # >= 2 grid steps (v7x cores)
        TB = max(128, min(max_tile, tb_vmem, tb_half))
    grid = pl.cdiv(B, TB)           # boundary block masks the tail columns

    def batch_spec(rows):
        return pl.BlockSpec((rows, TB), lambda i: (0, i))

    def resident(arr):              # full-array block, same for every step
        return pl.BlockSpec(arr.shape, lambda i: (0, 0))

    outT = pl.pallas_call(
        _mlp_kernel,
        out_shape=jax.ShapeDtypeStruct((D, B), out_dtype),
        grid=(grid,),
        in_specs=[
            batch_spec(Din),                  # xT (streamed per batch tile)
            resident(kparams["w1T"]),
            resident(kparams["b1"]),
            resident(kparams["w2T"]),
            resident(kparams["b2"]),
            resident(kparams["w3T"]),
            resident(kparams["b3"]),
        ],
        out_specs=batch_spec(D),
        compiler_params=pltpu.CompilerParams(
            dimension_semantics=("parallel",),           # megacore on v7x
            vmem_limit_bytes=32 * 1024 * 1024),
    )(xT, kparams["w1T"], kparams["b1"], kparams["w2T"], kparams["b2"],
      kparams["w3T"], kparams["b3"])

    return outT if out_layout == "db" else outT.T


def init_params(key, input_dim, hidden_dim):
    """Deterministic synthetic params, stored as (in, out): y = x @ W + b."""
    k1, k2, k3, k4, k5, k6 = jax.random.split(key, 6)
    s = 0.05
    return {
        "w1": s * jax.random.normal(k1, (input_dim + 1, hidden_dim), jnp.float32),
        "b1": s * jax.random.normal(k2, (1, hidden_dim), jnp.float32),
        "w2": s * jax.random.normal(k3, (hidden_dim, hidden_dim), jnp.float32),
        "b2": s * jax.random.normal(k4, (1, hidden_dim), jnp.float32),
        "w3": s * jax.random.normal(k5, (hidden_dim, input_dim), jnp.float32),
        "b3": s * jax.random.normal(k6, (1, input_dim), jnp.float32),
    }


def reference_forward(x, t, params, diffusion_steps):
    """Pure-JAX f32 reference mirroring the PyTorch module."""
    t_norm = (t.astype(jnp.float32) / jnp.float32(diffusion_steps))[:, None]
    x_in = jnp.concatenate([x, t_norm], axis=1)
    h1 = jnp.maximum(x_in @ params["w1"] + params["b1"], 0.0)
    h2 = jnp.maximum(h1 @ params["w2"] + params["b2"], 0.0)
    return h2 @ params["w3"] + params["b3"]


if __name__ == "__main__":
    batch = 8
    input_dim = 7
    hidden_dim = 32
    diffusion_steps = 100   # stands in for the global `current_diffusion_steps`

    key = jax.random.PRNGKey(0)
    kx, kt, kp, kx2, kt2 = jax.random.split(key, 5)

    x = jax.random.normal(kx, (batch, input_dim), jnp.float32)
    t = jax.random.randint(kt, (batch,), 0, diffusion_steps, jnp.int32)
    params = init_params(kp, input_dim, hidden_dim)
    kparams = prepare_params(params, diffusion_steps)      # one-time prep

    fwd = jax.jit(
        diffusion_mlp_forward,
        static_argnames=("max_tile", "vmem_budget", "min_kernel_batch",
                         "force_kernel", "x_layout", "out_layout", "out_dtype"))

    # 1) Tiny batch, Pallas path forced: single full block, TB == B.
    out = jax.block_until_ready(fwd(x, t, kparams, force_kernel=True))
    ref = reference_forward(x, t, params, diffusion_steps)
    assert out.shape == (batch, input_dim)
    assert jnp.allclose(out.astype(jnp.float32), ref, atol=2e-2, rtol=2e-2), \
        float(jnp.max(jnp.abs(out.astype(jnp.float32) - ref)))

    # 2) Gridded path with a partial boundary tile: B=600, TB=256 -> grid=3,
    #    last block has 88 valid columns (exercises boundary masking).
    big_b = 600
    x2 = jax.random.normal(kx2, (big_b, input_dim), jnp.float32)
    t2 = jax.random.randint(kt2, (big_b,), 0, diffusion_steps, jnp.int32)
    out2 = jax.block_until_ready(fwd(x2, t2, kparams, max_tile=256))
    ref2 = reference_forward(x2, t2, params, diffusion_steps)
    assert out2.shape == (big_b, input_dim)
    assert jnp.allclose(out2.astype(jnp.float32), ref2, atol=2e-2, rtol=2e-2), \
        float(jnp.max(jnp.abs(out2.astype(jnp.float32) - ref2)))

    # 3) Tiny-batch default dispatch goes to the fused XLA fallback.
    out3 = jax.block_until_ready(fwd(x, t, kparams))
    assert jnp.allclose(out3.astype(jnp.float32), ref, atol=2e-2, rtol=2e-2)

    print("KERNEL_OK")
</pallas_src>

<mosaic_0001>
module attributes {stable_mosaic.version = 11 : i64} {
  func.func @_mlp_kernel(%arg0: i32, %arg1: memref<8x8xbf16, #tpu.memory_space<vmem>>, %arg2: memref<32x8xbf16, #tpu.memory_space<vmem>>, %arg3: memref<32x1xf32, #tpu.memory_space<vmem>>, %arg4: memref<32x32xbf16, #tpu.memory_space<vmem>>, %arg5: memref<32x1xf32, #tpu.memory_space<vmem>>, %arg6: memref<7x32xbf16, #tpu.memory_space<vmem>>, %arg7: memref<7x1xf32, #tpu.memory_space<vmem>>, %arg8: memref<7x8xbf16, #tpu.memory_space<vmem>>) attributes {dimension_semantics = [#tpu.dimension_semantics<parallel>], iteration_bounds = array<i64: 1>, scalar_prefetch = 0 : i64, scratch_operands = 0 : i64, tpu.core_type = #tpu.core_type<tc>, window_params = [{transform_indices = @transform_0, window_bounds = array<i64: 8, 8>}, {pipeline_mode = #tpu.pipeline_mode<synchronous>, transform_indices = @transform_1, window_bounds = array<i64: 32, 8>}, {pipeline_mode = #tpu.pipeline_mode<synchronous>, transform_indices = @transform_2, window_bounds = array<i64: 32, 1>}, {pipeline_mode = #tpu.pipeline_mode<synchronous>, transform_indices = @transform_3, window_bounds = array<i64: 32, 32>}, {pipeline_mode = #tpu.pipeline_mode<synchronous>, transform_indices = @transform_4, window_bounds = array<i64: 32, 1>}, {pipeline_mode = #tpu.pipeline_mode<synchronous>, transform_indices = @transform_5, window_bounds = array<i64: 7, 32>}, {pipeline_mode = #tpu.pipeline_mode<synchronous>, transform_indices = @transform_6, window_bounds = array<i64: 7, 1>}, {transform_indices = @transform_7, window_bounds = array<i64: 7, 8>}]} {
    %c0 = arith.constant 0 : index
    %c0_0 = arith.constant 0 : index
    %0 = vector.load %arg1[%c0, %c0_0] : memref<8x8xbf16, #tpu.memory_space<vmem>>, vector<8x8xbf16>
    %c0_1 = arith.constant 0 : index
    %c0_2 = arith.constant 0 : index
    %1 = vector.load %arg2[%c0_1, %c0_2] : memref<32x8xbf16, #tpu.memory_space<vmem>>, vector<32x8xbf16>
    %cst = arith.constant dense<0.000000e+00> : vector<32x8xf32>
    %2 = tpu.matmul %1, %0, %cst {dimension_numbers = #tpu.dot_dimension_numbers<[1], [0], [0], [1], [0, 0, 1, 1], [], []>} : vector<32x8xbf16>, vector<8x8xbf16>, vector<32x8xf32> -> vector<32x8xf32>
    %c0_3 = arith.constant 0 : index
    %c0_4 = arith.constant 0 : index
    %3 = vector.load %arg3[%c0_3, %c0_4] : memref<32x1xf32, #tpu.memory_space<vmem>>, vector<32x1xf32>
    %4 = vector.broadcast %3 : vector<32x1xf32> to vector<32x8xf32>
    %5 = arith.addf %2, %4 : vector<32x8xf32>
    %cst_5 = arith.constant 0.000000e+00 : f32
    %6 = vector.broadcast %cst_5 : f32 to vector<32x8xf32>
    %7 = arith.maximumf %5, %6 : vector<32x8xf32>
    %c0_6 = arith.constant 0 : index
    %c0_7 = arith.constant 0 : index
    %8 = vector.load %arg4[%c0_6, %c0_7] : memref<32x32xbf16, #tpu.memory_space<vmem>>, vector<32x32xbf16>
    %9 = arith.truncf %7 : vector<32x8xf32> to vector<32x8xbf16>
    %cst_8 = arith.constant dense<0.000000e+00> : vector<32x8xf32>
    %10 = tpu.matmul %8, %9, %cst_8 {dimension_numbers = #tpu.dot_dimension_numbers<[1], [0], [0], [1], [0, 0, 1, 1], [], []>} : vector<32x32xbf16>, vector<32x8xbf16>, vector<32x8xf32> -> vector<32x8xf32>
    %c0_9 = arith.constant 0 : index
    %c0_10 = arith.constant 0 : index
    %11 = vector.load %arg5[%c0_9, %c0_10] : memref<32x1xf32, #tpu.memory_space<vmem>>, vector<32x1xf32>
    %12 = vector.broadcast %11 : vector<32x1xf32> to vector<32x8xf32>
    %13 = arith.addf %10, %12 : vector<32x8xf32>
    %cst_11 = arith.constant 0.000000e+00 : f32
    %14 = vector.broadcast %cst_11 : f32 to vector<32x8xf32>
    %15 = arith.maximumf %13, %14 : vector<32x8xf32>
    %c0_12 = arith.constant 0 : index
    %c0_13 = arith.constant 0 : index
    %16 = vector.load %arg6[%c0_12, %c0_13] : memref<7x32xbf16, #tpu.memory_space<vmem>>, vector<7x32xbf16>
    %17 = arith.truncf %15 : vector<32x8xf32> to vector<32x8xbf16>
    %cst_14 = arith.constant dense<0.000000e+00> : vector<7x8xf32>
    %18 = tpu.matmul %16, %17, %cst_14 {dimension_numbers = #tpu.dot_dimension_numbers<[1], [0], [0], [1], [0, 0, 1, 1], [], []>} : vector<7x32xbf16>, vector<32x8xbf16>, vector<7x8xf32> -> vector<7x8xf32>
    %c0_15 = arith.constant 0 : index
    %c0_16 = arith.constant 0 : index
    %19 = vector.load %arg7[%c0_15, %c0_16] : memref<7x1xf32, #tpu.memory_space<vmem>>, vector<7x1xf32>
    %20 = vector.broadcast %19 : vector<7x1xf32> to vector<7x8xf32>
    %21 = arith.addf %18, %20 : vector<7x8xf32>
    %22 = arith.truncf %21 : vector<7x8xf32> to vector<7x8xbf16>
    %c0_17 = arith.constant 0 : index
    %c0_18 = arith.constant 0 : index
    %23 = vector.load %arg8[%c0_17, %c0_18] : memref<7x8xbf16, #tpu.memory_space<vmem>>, vector<7x8xbf16>
    tpu.vector_store %arg8[%c0_17, %c0_18], %22 {strides = array<i32>} : memref<7x8xbf16, #tpu.memory_space<vmem>>, vector<7x8xbf16>,
    return
  }
  func.func @transform_0(%arg0: i32) -> (i32, i32) {
    %c0_i32 = arith.constant 0 : i32
    %c0_i32_0 = arith.constant 0 : i32
    return %c0_i32, %arg0 : i32, i32
  }
  func.func @transform_1(%arg0: i32) -> (i32, i32) {
    %c0_i32 = arith.constant 0 : i32
    %c0_i32_0 = arith.constant 0 : i32
    %c0_i32_1 = arith.constant 0 : i32
    return %c0_i32, %c0_i32_0 : i32, i32
  }
  func.func @transform_2(%arg0: i32) -> (i32, i32) {
    %c0_i32 = arith.constant 0 : i32
    %c0_i32_0 = arith.constant 0 : i32
    %c0_i32_1 = arith.constant 0 : i32
    return %c0_i32, %c0_i32_0 : i32, i32
  }
  func.func @transform_3(%arg0: i32) -> (i32, i32) {
    %c0_i32 = arith.constant 0 : i32
    %c0_i32_0 = arith.constant 0 : i32
    %c0_i32_1 = arith.constant 0 : i32
    return %c0_i32, %c0_i32_0 : i32, i32
  }
  func.func @transform_4(%arg0: i32) -> (i32, i32) {
    %c0_i32 = arith.constant 0 : i32
    %c0_i32_0 = arith.constant 0 : i32
    %c0_i32_1 = arith.constant 0 : i32
    return %c0_i32, %c0_i32_0 : i32, i32
  }
  func.func @transform_5(%arg0: i32) -> (i32, i32) {
    %c0_i32 = arith.constant 0 : i32
    %c0_i32_0 = arith.constant 0 : i32
    %c0_i32_1 = arith.constant 0 : i32
    return %c0_i32, %c0_i32_0 : i32, i32
  }
  func.func @transform_6(%arg0: i32) -> (i32, i32) {
    %c0_i32 = arith.constant 0 : i32
    %c0_i32_0 = arith.constant 0 : i32
    %c0_i32_1 = arith.constant 0 : i32
    return %c0_i32, %c0_i32_0 : i32, i32
  }
  func.func @transform_7(%arg0: i32) -> (i32, i32) {
    %c0_i32 = arith.constant 0 : i32
    %c0_i32_0 = arith.constant 0 : i32
    return %c0_i32, %arg0 : i32, i32
  }
}

</mosaic_0001>

<bundles_post_ra>
// kernel: diffusion_mlp_forward.1
= control target key start
LH: loop header
LB: loop body
LE: loop exit
PB: predicated region body
PF: predicated region fallthrough
CT: control target
= control target key end

     0   :  { %vm73_vm0 = vcmask 1043456   ;;  %vm66_vm1 = vcmask 64512   ;;  %v344_v1 = vmov 0   ;;  %vm170_vm2 = vcmask 261120   ;;  %s443_s0 = inlined_call_operand.vmem [shape: bf16[8,8], index: 0, kind: input, shape index: {}]   ;;  %s444_s1 = inlined_call_operand.vmem [shape: bf16[32,8], index: 1, kind: input, shape index: {}]   ;;  %s445_s2 = inlined_call_operand.vmem [shape: f32[32,1], index: 2, kind: input, shape index: {}]   ;;  %s446_s4 = inlined_call_operand.vmem [shape: f32[32,1], index: 4, kind: input, shape index: {}]   ;;  %s447_s6 = inlined_call_operand.vmem [shape: f32[7,1], index: 6, kind: input, shape index: {}]   ;;  %s448_s3 = inlined_call_operand.vmem [shape: bf16[32,32], index: 3, kind: input, shape index: {}]   ;;  %s449_s5 = inlined_call_operand.vmem [shape: bf16[7,32], index: 5, kind: input, shape index: {}]   ;;  %s450_s7 = inlined_call_operand.vmem [shape: bf16[7,8], index: 7, kind: output, shape index: {}]  }
   0x1   :  { %v27_v0 = vld [vmem:[%s443_s0] sm:$0xf]  ;;  %338 = vset.pattern.permute.xlu0 %v344_v1  ;;  %339 = vset.pattern.permute.xlu1 %v344_v1  ;;  %v341_v4 = vld [vmem:[%s444_s1 + $0x8] sm:$0xff]   ;;  %v34_v6 = vld [vmem:[%s445_s2 + $0x10] sm:$0xff]  ;;  %v345_v34 = vmov 0.0   ;;  %vm346_vm3 = vmmov 0  }
   0x2   :  { %334 = vmatprep.subr.msk.bf16.mxu0 %vm73_vm0, %v27_v0  ;;  %v75_v2 = vsel %vm73_vm0, %v27_v0, 0  ;;  %v340_v3 = vld [vmem:[%s444_s1] sm:$0xff]   ;;  %v33_v7 = vld [vmem:[%s445_s2 + $0x8] sm:$0xff]  ;;  %48 = vperm.xlu1 %339, %v34_v6   ;;  %v35_v8 = vld [vmem:[%s445_s2 + $0x18] sm:$0xff]  ;;  %vm283_vm4 = vcmask 60416  }
   0x3   :  { %313 = vmatpush3.bf16.msra.mxu0 %v75_v2  ;;  %v32_v5 = vld [vmem:[%s445_s2] sm:$0xff]  ;;  %314 = vmatprep.mubr.msk.bf16.mxu0 %vm66_vm1, %v340_v3  ;;  %v137_v10 = vld [vmem:[%s446_s4 + $0x8] sm:$0xff]  ;;  %v138_v11 = vld [vmem:[%s446_s4 + $0x10] sm:$0xff]  ;;  %vm284_vm5 = vsmask.f32 3328 }
   0x4   :  { %38 = vperm.xlu0 %338, %v32_v5   ;;  %v136_v9 = vld [vmem:[%s446_s4] sm:$0xff]  ;;  %v139_v12 = vld [vmem:[%s446_s4 + $0x18] sm:$0xff]  ;;  %v343_v33 = vld [vmem:[%s448_s3 + $0x8] sm:$0xff]   ;;  %326 = vmatprep.subr.bf16.mxu0 %v345_v34 }
   0x5   :  { %v233_v13 = vld [vmem:[%s447_s6] sm:$0x7f]  ;;  %vm285_vm6 = vmand %vm283_vm4, %vm284_vm5 }
   0x6   :  { %315 = vmatmul.mubr.msk.bf16.vlgmr.msra.gmra.mrb[0].mxu0 %vm66_vm1, %v341_v4  ;;  %53 = vperm.xlu1 %339, %v35_v8   ;;  %v342_v14 = vld [vmem:[%s448_s3] sm:$0xff]  }
   0x7   :  { %322 = vmatprep.mubr.msk.bf16.mxu1 %vm170_vm2, %v342_v14  ;;  %330 = vmatprep.mubr.msk.bf16.mxu0 %vm346_vm3, %v345_v34  ;;  %v230_v53 = vld [vmem:[%s449_s5] sm:$0xf] }
   0x8   :  { %43 = vperm.xlu0 %338, %v33_v7   ;;  %v286_v58 = vld [vmem:[%s450_s7] sm:$0xf] }
   0xa   :  { %147 = vperm.xlu1 %339, %v137_v10  }
   0xc   :  { %142 = vperm.xlu0 %338, %v136_v9  }
   0xe   :  { %157 = vperm.xlu1 %339, %v139_v12  }
  0x10   :  { %152 = vperm.xlu0 %338, %v138_v11  }
  0x14   :  { %236 = vperm.xlu0 %338, %v233_v13  }
  0x81   :  { %v49_v15 = vpop.permute.xlu1 %48 }
  0x83   :  { %v39_v16 = vpop.permute.xlu0 %38 }
  0x85   :  { %v54_v20 = vpop.permute.xlu1 %53 }
  0x87   :  { %v44_v23 = vpop.permute.xlu0 %43 }
  0x89   :  { %v148_v36 = vpop.permute.xlu1 %147 }
  0x8b   :  { %v143_v35 = vpop.permute.xlu0 %142 }
  0x8d   :  { %v158_v41 = vpop.permute.xlu1 %157 }
  0x8f   :  { %v153_v37 = vpop.permute.xlu0 %152 }
  0x93   :  { %v237_v54 = vpop.permute.xlu0 %236 }
  0xd9   :  { %v316_v17 = vpop.f32.mrb[0].mxu0 }
  0xda   :  { %v120_v18 = vadd.f32 %v316_v17, %v49_v15  ;;  %v111_v19 = vpop.f32.mrb[1].mxu0 }
  0xdb   :  { %v112_v21 = vadd.f32 %v111_v19, %v39_v16  ;;  %v317_v22 = vpop.f32.mrb[2].mxu0 }
  0xdc   :  { %v123_v24 = vadd.f32 %v317_v22, %v54_v20  ;;  %v114_v25 = vpop.f32.mrb[3].mxu0  ;;  %v128_v27 = vmax.f32 %v120_v18, 0.0 }
  0xdd   :  { %v115_v26 = vadd.f32 %v114_v25, %v44_v23  ;;  %v126_v29 = vmax.f32 %v112_v21, 0.0 }
  0xde   :  { %v129_v28 = vmax.f32 %v123_v24, 0.0 }
  0xdf   :  { %v127_v30 = vmax.f32 %v115_v26, 0.0 }
  0xe0   :  { %v135_v31 = vpack.c.bf16 %v129_v28, %v128_v27 }
  0xe1   :  { %v134_v32 = vpack.c.bf16 %v127_v30, %v126_v29 }
  0xe3   :  { %318 = vmatprep.subr.bf16.mxu1 %v134_v32 }
  0xe4   :  { %319 = vmatpush3.bf16.msra.mxu1 %v134_v32 }
  0xe5   :  { %320 = vmatprep.subr.bf16.mxu1 %v135_v31 }
  0xe8   :  { %321 = vmatpush3.bf16.msra.mxu1 %v135_v31 }
  0xeb   :  { %323 = vmatmul.mubr.msk.bf16.vlgmr.msra.gmra.mrb[0].mxu1 %vm170_vm2, %v343_v33 }
 0x1be   :  { %v324_v38 = vpop.f32.mrb[0].mxu1 }
 0x1bf   :  { %v220_v39 = vadd.f32 %v324_v38, %v153_v37  ;;  %v211_v40 = vpop.f32.mrb[1].mxu1 }
 0x1c0   :  { %v212_v42 = vadd.f32 %v211_v40, %v143_v35  ;;  %v325_v43 = vpop.f32.mrb[2].mxu1 }
 0x1c1   :  { %v223_v44 = vadd.f32 %v325_v43, %v158_v41  ;;  %v214_v45 = vpop.f32.mrb[3].mxu1  ;;  %v228_v47 = vmax.f32 %v220_v39, 0.0 }
 0x1c2   :  { %v215_v46 = vadd.f32 %v214_v45, %v148_v36  ;;  %v226_v49 = vmax.f32 %v212_v42, 0.0 }
 0x1c3   :  { %v229_v48 = vmax.f32 %v223_v44, 0.0 }
 0x1c4   :  { %v227_v50 = vmax.f32 %v215_v46, 0.0 }
 0x1c5   :  { %v232_v51 = vpack.c.bf16 %v229_v48, %v228_v47 }
 0x1c6   :  { %v231_v52 = vpack.c.bf16 %v227_v50, %v226_v49 }
 0x1c8   :  { %327 = vmatpush3.bf16.msra.mxu0 %v231_v52 }
 0x1c9   :  { %328 = vmatprep.subr.bf16.mxu0 %v345_v34 }
 0x1cc   :  { %329 = vmatpush3.bf16.msra.mxu0 %v232_v51 }
 0x1cf   :  { %331 = vmatmul.mubr.msk.bf16.vlgmr.msra.gmra.mrb[4].mxu0 %vm170_vm2, %v230_v53 }
 0x2a2   :  { %v276_v55 = vpop.f32.mrb[4].mxu0 }
 0x2a3   :  { %v277_v56 = vadd.f32 %v276_v55, %v237_v54  ;;  %v332_v57 = vpop.f32.mrb[5].mxu0 }
 0x2a4   :  { %v279_v59 = vpop.f32.mrb[6].mxu0 }
 0x2a5   :  { %v282_v60 = vpack.c.bf16 %v277_v56, %v277_v56  ;;  %v333_v61 = vpop.f32.mrb[7].mxu0 }
 0x2a7   :  { %v287_v62 = vsel %vm285_vm6, %v282_v60, %v286_v58 }
 0x2a8   :  { %288 = vst [vmem:[%s450_s7] sm:$0xf] %v287_v62 }

</bundles_post_ra>
